<compile_context>
chip_gen: v7x
topology: tpu7x:2x2x1
jax: 0.10.0
libtpu: 0.0.40
codegen_flags: <defaults>
</compile_context>

<pallas_src>
import functools

import numpy as np

import jax
import jax.numpy as jnp
from jax.experimental import pallas as pl
from jax.experimental.pallas import tpu as pltpu


# MXU operand dtype (accumulation is always f32). Set to jnp.float32 to match
# an f32 reference bit-for-bit (modulo reduction order).
_MXU_DTYPE = jnp.bfloat16


def _round_up(x, m):
    return (x + m - 1) // m * m


# ----------------------------------------------------------------------------
# The fused kernel: embed-conv(x12) + bias + ReLU + masked max-pool + FC(x5)
# ----------------------------------------------------------------------------

def _cnn_text_fused_kernel(emb_ref, cw_ref, cb_ref, mask_ref, fw_ref, fb_ref,
                           out_ref):
    """One body for the whole post-embedding forward pass.

    emb_ref : (Bp, Lp, D)    zero-padded embeddings (Bp mult of 8)
    cw_ref  : (Kmax, D, Cp)  12 conv filters stacked on the channel axis,
                             zero-padded taps for K < Kmax, Cp mult of 128
    cb_ref  : (1, Cp)        stacked conv biases
    mask_ref: (T, Cp)        1.0 where time position t is a valid conv output
                             for that channel's kernel size, else 0.0
    fw_ref  : (Cp, Fp)       fc1..fc4 block-diagonal + big fc, Fp mult of 128
    fb_ref  : (1, Fp)
    out_ref : (Bp, Fp)       logits slab; columns [i*C:(i+1)*C] = out_{i+1}
    """
    Bp = emb_ref.shape[0]
    n_taps = cw_ref.shape[0]
    T, Cp = mask_ref.shape

    x = emb_ref[...]                                        # (Bp, Lp, D) f32

    # Conv as n_taps shifted (Bp, T, D) x (D, Cp) contractions on the MXU,
    # accumulated in f32. All 12 filters share the single 256-wide output.
    acc = jnp.zeros((Bp, T, Cp), jnp.float32)
    for k in range(n_taps):                                 # static unroll
        acc += jax.lax.dot_general(
            x[:, k:k + T, :].astype(cw_ref.dtype),
            cw_ref[k],
            dimension_numbers=(((2,), (0,)), ((), ())),
            preferred_element_type=jnp.float32,
        )

    acc = jnp.maximum(acc + cb_ref[...][None], 0.0)         # bias + ReLU (f32)
    # Zero out time positions that are out of range for a channel's kernel
    # size (and the zero-padded tail rows). Safe: post-ReLU max is >= 0.
    acc = acc * mask_ref[...][None]
    feats = jnp.max(acc, axis=1)                            # (Bp, Cp) pooled

    # nn.Dropout in eval mode is the identity.
    # TODO(synk): training-mode dropout (random masking + 1/(1-p) scaling).

    # Fused fc1..fc4 + fc: one lane-dense (Bp, Cp) x (Cp, Fp) matmul.
    out_ref[...] = (
        jnp.dot(feats.astype(fw_ref.dtype), fw_ref[...],
                preferred_element_type=jnp.float32)
        + fb_ref[...]
    )


def cnn_text_fused_call(emb_p, conv_w, conv_b, mask, fc_w, fc_b):
    Bp = emb_p.shape[0]
    n_taps, D, Cp = conv_w.shape
    Fp = fc_w.shape[1]
    T = mask.shape[0]

    flops = 2 * Bp * T * n_taps * D * Cp + 2 * Bp * Cp * Fp
    bytes_accessed = int(
        sum(int(a.size) * a.dtype.itemsize
            for a in (emb_p, conv_w, conv_b, mask, fc_w, fc_b))
        + Bp * Fp * 4)

    return pl.pallas_call(
        _cnn_text_fused_kernel,
        out_shape=jax.ShapeDtypeStruct((Bp, Fp), jnp.float32),
        in_specs=[pl.BlockSpec(memory_space=pltpu.MemorySpace.VMEM)] * 6,
        out_specs=pl.BlockSpec(memory_space=pltpu.MemorySpace.VMEM),
        cost_estimate=pl.CostEstimate(flops=flops, transcendentals=0,
                                      bytes_accessed=bytes_accessed),
    )(emb_p, conv_w, conv_b, mask, fc_w, fc_b)


# ----------------------------------------------------------------------------
# Model wrapper (glue: embedding gather + padding + output slicing)
# ----------------------------------------------------------------------------

def cnn_text_forward(fused, token_ids, *, class_num):
    """Returns (out1, out2, out3, out4, out), each (B, class_num)."""
    B, L = token_ids.shape
    kmax = fused["conv_w"].shape[0]
    T_pad = fused["mask"].shape[0]          # sublane-aligned conv output length
    Lp = T_pad + kmax - 1                   # padded seq len so all taps fit
    Bp = _round_up(B, 8)                    # sublane-aligned batch

    # Embedding lookup kept as one tiny XLA gather; the fused kernel then
    # loads the result exactly once (previously: 12 redundant DMAs).
    # TODO(synk): at production vocab sizes, move the gather in-kernel via
    # scalar-prefetched token ids to skip this HBM round-trip.
    emb = fused["embedding"][token_ids].astype(jnp.float32)      # (B, L, D)
    emb = jnp.pad(emb, ((0, Bp - B), (0, Lp - L), (0, 0)))       # (Bp, Lp, D)

    out_big = cnn_text_fused_call(emb, fused["conv_w"], fused["conv_b"],
                                  fused["mask"], fused["fc_w"], fused["fc_b"])

    C = class_num
    out1, out2, out3, out4, out = (out_big[:B, i * C:(i + 1) * C]
                                   for i in range(5))
    return out1, out2, out3, out4, out


# ----------------------------------------------------------------------------
# Parameter construction
# ----------------------------------------------------------------------------

def init_params(key, *, V, D, Co, Ks, C):
    """Per-layer params in the documented layout (conv (K,D,Co), fc (in,out))."""
    keys = iter(jax.random.split(key, 64))
    params = {}
    params["embedding"] = 0.1 * jax.random.normal(next(keys), (V, D), jnp.float32)
    for g in range(4):
        ws, bs = [], []
        for K in Ks:
            ws.append(0.1 * jax.random.normal(next(keys), (K, D, Co), jnp.float32))
            bs.append(0.1 * jax.random.normal(next(keys), (1, Co), jnp.float32))
        params[f"conv{g + 1}_w"] = ws
        params[f"conv{g + 1}_b"] = bs
    F_in = len(Ks) * Co
    for name, fin in (("fc1", F_in), ("fc2", F_in), ("fc3", F_in),
                      ("fc4", F_in), ("fc", 4 * F_in)):
        params[f"{name}_w"] = 0.1 * jax.random.normal(next(keys), (fin, C), jnp.float32)
        params[f"{name}_b"] = 0.1 * jax.random.normal(next(keys), (1, C), jnp.float32)
    return params


def build_fused_params(params, *, L, Ks, Co, C):
    """Stack + zero-pad per-layer params into the kernel's fused/lane-dense layout."""
    D = params["embedding"].shape[1]
    Kmax, Kmin = max(Ks), min(Ks)
    n_groups = 4
    F_in = len(Ks) * Co                       # per-group feature width (48)
    C_total = n_groups * F_in                 # 192 pooled channels
    Cp = _round_up(C_total, 128)              # lane-dense pooled width (256)
    Fp = _round_up(5 * C, 128)                # lane-dense logits width (128)
    T_pad = _round_up(L - Kmin + 1, 8)        # sublane-aligned conv length

    conv_w = np.zeros((Kmax, D, Cp), np.float32)
    conv_b = np.zeros((1, Cp), np.float32)
    mask = np.zeros((T_pad, Cp), np.float32)
    col = 0
    for g in range(n_groups):
        for ki, K in enumerate(Ks):
            w = np.asarray(params[f"conv{g + 1}_w"][ki])    # (K, D, Co)
            b = np.asarray(params[f"conv{g + 1}_b"][ki])    # (1, Co)
            conv_w[:K, :, col:col + Co] = w                 # taps >= K stay 0
            conv_b[:, col:col + Co] = b
            mask[: L - K + 1, col:col + Co] = 1.0           # valid conv outputs
            col += Co

    fc_w = np.zeros((Cp, Fp), np.float32)
    fc_b = np.zeros((1, Fp), np.float32)
    for gi in range(n_groups):                               # fc1..fc4 (block-diag)
        fc_w[gi * F_in:(gi + 1) * F_in, gi * C:(gi + 1) * C] = \
            np.asarray(params[f"fc{gi + 1}_w"])
        fc_b[:, gi * C:(gi + 1) * C] = np.asarray(params[f"fc{gi + 1}_b"])
    fc_w[:C_total, 4 * C:5 * C] = np.asarray(params["fc_w"])  # big fc on concat
    fc_b[:, 4 * C:5 * C] = np.asarray(params["fc_b"])

    return {
        "embedding": jnp.asarray(params["embedding"], jnp.float32),
        "conv_w": jnp.asarray(conv_w, _MXU_DTYPE),
        "conv_b": jnp.asarray(conv_b, jnp.float32),
        "mask": jnp.asarray(mask, jnp.float32),
        "fc_w": jnp.asarray(fc_w, _MXU_DTYPE),
        "fc_b": jnp.asarray(fc_b, jnp.float32),
    }


if __name__ == "__main__":
    # Small shapes consistent with the module:
    # batch=2, seq_len=16, vocab=50, embed_dim=32, kernel_num=16, Ks=[3,4,5], class_num=2
    B, L, V, D, Co, C = 2, 16, 50, 32, 16, 2
    Ks = [3, 4, 5]

    key = jax.random.PRNGKey(0)
    k_params, k_x = jax.random.split(key)
    params = init_params(k_params, V=V, D=D, Co=Co, Ks=Ks, C=C)
    fused = build_fused_params(params, L=L, Ks=Ks, Co=Co, C=C)
    token_ids = jax.random.randint(k_x, (B, L), 0, V, dtype=jnp.int32)

    forward = jax.jit(functools.partial(cnn_text_forward, class_num=C))
    outs = forward(fused, token_ids)
    outs = jax.block_until_ready(outs)

    # Sanity-check shapes match the PyTorch forward: 5 outputs of (B, class_num).
    assert all(o.shape == (B, C) for o in outs)
    print("KERNEL_OK")
</pallas_src>

<mosaic_0001>
module attributes {stable_mosaic.version = 11 : i64} {
  func.func @_cnn_text_fused_kernel(%arg0: memref<8x20x32xf32, #tpu.memory_space<vmem>>, %arg1: memref<5x32x256xbf16, #tpu.memory_space<vmem>>, %arg2: memref<1x256xf32, #tpu.memory_space<vmem>>, %arg3: memref<16x256xf32, #tpu.memory_space<vmem>>, %arg4: memref<256x128xbf16, #tpu.memory_space<vmem>>, %arg5: memref<1x128xf32, #tpu.memory_space<vmem>>, %arg6: memref<8x128xf32, #tpu.memory_space<vmem>>) attributes {dimension_semantics = [], scalar_prefetch = 0 : i64, scratch_operands = 0 : i64, tpu.core_type = #tpu.core_type<tc>} {
    %c0 = arith.constant 0 : index
    %c0_0 = arith.constant 0 : index
    %c0_1 = arith.constant 0 : index
    %0 = vector.load %arg0[%c0, %c0_0, %c0_1] : memref<8x20x32xf32, #tpu.memory_space<vmem>>, vector<8x20x32xf32>
    %cst = arith.constant 0.000000e+00 : f32
    %1 = vector.broadcast %cst : f32 to vector<8x16x256xf32>
    %2 = vector.extract_strided_slice %0 {offsets = [0, 0, 0], sizes = [8, 16, 32], strides = [1, 1, 1]} : vector<8x20x32xf32> to vector<8x16x32xf32>
    %3 = arith.truncf %2 : vector<8x16x32xf32> to vector<8x16x32xbf16>
    %c0_2 = arith.constant 0 : index
    %c0_3 = arith.constant 0 : index
    %c0_4 = arith.constant 0 : index
    %4 = vector.load %arg1[%c0_2, %c0_3, %c0_4] : memref<5x32x256xbf16, #tpu.memory_space<vmem>>, vector<1x32x256xbf16>
    %5 = vector.shape_cast %4 : vector<1x32x256xbf16> to vector<32x256xbf16>
    %cst_5 = arith.constant dense<0.000000e+00> : vector<8x16x256xf32>
    %6 = tpu.matmul %3, %5, %cst_5 {dimension_numbers = #tpu.dot_dimension_numbers<[2], [0], [0, 1], [1], [0, 0, 0, 1, 1, 1], [], []>} : vector<8x16x32xbf16>, vector<32x256xbf16>, vector<8x16x256xf32> -> vector<8x16x256xf32>
    %7 = arith.addf %1, %6 : vector<8x16x256xf32>
    %8 = vector.extract_strided_slice %0 {offsets = [0, 1, 0], sizes = [8, 16, 32], strides = [1, 1, 1]} : vector<8x20x32xf32> to vector<8x16x32xf32>
    %9 = arith.truncf %8 : vector<8x16x32xf32> to vector<8x16x32xbf16>
    %c1 = arith.constant 1 : index
    %c0_6 = arith.constant 0 : index
    %c0_7 = arith.constant 0 : index
    %10 = vector.load %arg1[%c1, %c0_6, %c0_7] : memref<5x32x256xbf16, #tpu.memory_space<vmem>>, vector<1x32x256xbf16>
    %11 = vector.shape_cast %10 : vector<1x32x256xbf16> to vector<32x256xbf16>
    %cst_8 = arith.constant dense<0.000000e+00> : vector<8x16x256xf32>
    %12 = tpu.matmul %9, %11, %cst_8 {dimension_numbers = #tpu.dot_dimension_numbers<[2], [0], [0, 1], [1], [0, 0, 0, 1, 1, 1], [], []>} : vector<8x16x32xbf16>, vector<32x256xbf16>, vector<8x16x256xf32> -> vector<8x16x256xf32>
    %13 = arith.addf %7, %12 : vector<8x16x256xf32>
    %14 = vector.extract_strided_slice %0 {offsets = [0, 2, 0], sizes = [8, 16, 32], strides = [1, 1, 1]} : vector<8x20x32xf32> to vector<8x16x32xf32>
    %15 = arith.truncf %14 : vector<8x16x32xf32> to vector<8x16x32xbf16>
    %c2 = arith.constant 2 : index
    %c0_9 = arith.constant 0 : index
    %c0_10 = arith.constant 0 : index
    %16 = vector.load %arg1[%c2, %c0_9, %c0_10] : memref<5x32x256xbf16, #tpu.memory_space<vmem>>, vector<1x32x256xbf16>
    %17 = vector.shape_cast %16 : vector<1x32x256xbf16> to vector<32x256xbf16>
    %cst_11 = arith.constant dense<0.000000e+00> : vector<8x16x256xf32>
    %18 = tpu.matmul %15, %17, %cst_11 {dimension_numbers = #tpu.dot_dimension_numbers<[2], [0], [0, 1], [1], [0, 0, 0, 1, 1, 1], [], []>} : vector<8x16x32xbf16>, vector<32x256xbf16>, vector<8x16x256xf32> -> vector<8x16x256xf32>
    %19 = arith.addf %13, %18 : vector<8x16x256xf32>
    %20 = vector.extract_strided_slice %0 {offsets = [0, 3, 0], sizes = [8, 16, 32], strides = [1, 1, 1]} : vector<8x20x32xf32> to vector<8x16x32xf32>
    %21 = arith.truncf %20 : vector<8x16x32xf32> to vector<8x16x32xbf16>
    %c3 = arith.constant 3 : index
    %c0_12 = arith.constant 0 : index
    %c0_13 = arith.constant 0 : index
    %22 = vector.load %arg1[%c3, %c0_12, %c0_13] : memref<5x32x256xbf16, #tpu.memory_space<vmem>>, vector<1x32x256xbf16>
    %23 = vector.shape_cast %22 : vector<1x32x256xbf16> to vector<32x256xbf16>
    %cst_14 = arith.constant dense<0.000000e+00> : vector<8x16x256xf32>
    %24 = tpu.matmul %21, %23, %cst_14 {dimension_numbers = #tpu.dot_dimension_numbers<[2], [0], [0, 1], [1], [0, 0, 0, 1, 1, 1], [], []>} : vector<8x16x32xbf16>, vector<32x256xbf16>, vector<8x16x256xf32> -> vector<8x16x256xf32>
    %25 = arith.addf %19, %24 : vector<8x16x256xf32>
    %26 = vector.extract_strided_slice %0 {offsets = [0, 4, 0], sizes = [8, 16, 32], strides = [1, 1, 1]} : vector<8x20x32xf32> to vector<8x16x32xf32>
    %27 = arith.truncf %26 : vector<8x16x32xf32> to vector<8x16x32xbf16>
    %c4 = arith.constant 4 : index
    %c0_15 = arith.constant 0 : index
    %c0_16 = arith.constant 0 : index
    %28 = vector.load %arg1[%c4, %c0_15, %c0_16] : memref<5x32x256xbf16, #tpu.memory_space<vmem>>, vector<1x32x256xbf16>
    %29 = vector.shape_cast %28 : vector<1x32x256xbf16> to vector<32x256xbf16>
    %cst_17 = arith.constant dense<0.000000e+00> : vector<8x16x256xf32>
    %30 = tpu.matmul %27, %29, %cst_17 {dimension_numbers = #tpu.dot_dimension_numbers<[2], [0], [0, 1], [1], [0, 0, 0, 1, 1, 1], [], []>} : vector<8x16x32xbf16>, vector<32x256xbf16>, vector<8x16x256xf32> -> vector<8x16x256xf32>
    %31 = arith.addf %25, %30 : vector<8x16x256xf32>
    %c0_18 = arith.constant 0 : index
    %c0_19 = arith.constant 0 : index
    %32 = vector.load %arg2[%c0_18, %c0_19] : memref<1x256xf32, #tpu.memory_space<vmem>>, vector<1x256xf32>
    %33 = vector.shape_cast %32 : vector<1x256xf32> to vector<1x1x256xf32>
    %34 = vector.broadcast %33 : vector<1x1x256xf32> to vector<8x16x256xf32>
    %35 = arith.addf %31, %34 : vector<8x16x256xf32>
    %cst_20 = arith.constant 0.000000e+00 : f32
    %36 = vector.broadcast %cst_20 : f32 to vector<8x16x256xf32>
    %37 = arith.maximumf %35, %36 : vector<8x16x256xf32>
    %c0_21 = arith.constant 0 : index
    %c0_22 = arith.constant 0 : index
    %38 = vector.load %arg3[%c0_21, %c0_22] : memref<16x256xf32, #tpu.memory_space<vmem>>, vector<16x256xf32>
    %39 = vector.shape_cast %38 : vector<16x256xf32> to vector<1x16x256xf32>
    %40 = vector.broadcast %39 : vector<1x16x256xf32> to vector<8x16x256xf32>
    %41 = arith.mulf %37, %40 : vector<8x16x256xf32>
    %cst_23 = arith.constant dense<0xFF800000> : vector<8x256xf32>
    %42 = vector.multi_reduction <maximumf>, %41, %cst_23 [1] : vector<8x16x256xf32> to vector<8x256xf32>
    %43 = arith.truncf %42 : vector<8x256xf32> to vector<8x256xbf16>
    %c0_24 = arith.constant 0 : index
    %c0_25 = arith.constant 0 : index
    %44 = vector.load %arg4[%c0_24, %c0_25] : memref<256x128xbf16, #tpu.memory_space<vmem>>, vector<256x128xbf16>
    %cst_26 = arith.constant dense<0.000000e+00> : vector<8x128xf32>
    %45 = tpu.matmul %43, %44, %cst_26 {dimension_numbers = #tpu.dot_dimension_numbers<[1], [0], [0], [1], [0, 0, 1, 1], [], []>} : vector<8x256xbf16>, vector<256x128xbf16>, vector<8x128xf32> -> vector<8x128xf32>
    %c0_27 = arith.constant 0 : index
    %c0_28 = arith.constant 0 : index
    %46 = vector.load %arg5[%c0_27, %c0_28] : memref<1x128xf32, #tpu.memory_space<vmem>>, vector<1x128xf32>
    %47 = vector.broadcast %46 : vector<1x128xf32> to vector<8x128xf32>
    %48 = arith.addf %45, %47 : vector<8x128xf32>
    %c0_29 = arith.constant 0 : index
    %c0_30 = arith.constant 0 : index
    %49 = vector.load %arg6[%c0_29, %c0_30] : memref<8x128xf32, #tpu.memory_space<vmem>>, vector<8x128xf32>
    tpu.vector_store %arg6[%c0_29, %c0_30], %48 {strides = array<i32>} : memref<8x128xf32, #tpu.memory_space<vmem>>, vector<8x128xf32>,
    return
  }
}

</mosaic_0001>

<bundles_post_ra>
// kernel: cnn_text_forward.1
= control target key start
LH: loop header
LB: loop body
LE: loop exit
PB: predicated region body
PF: predicated region fallthrough
CT: control target
= control target key end

     0   :  { %v1965_v1 = vmov 0   ;;  %vm190_vm0 = vcmask 261120   ;;  %vm498_vm1 = vcmask 1046528   ;;  %vm73_vm2 = vsmask.f32 7424  ;;  %s2717_s1 = inlined_call_operand.vmem [shape: bf16[5,32,256], index: 1, kind: input, shape index: {}]   ;;  %s2718_s0 = inlined_call_operand.vmem [shape: f32[8,20,32], index: 0, kind: input, shape index: {}]   ;;  %s2719_s4 = inlined_call_operand.vmem [shape: bf16[256,128], index: 4, kind: input, shape index: {}]   ;;  %s2720_s2 = inlined_call_operand.vmem [shape: f32[1,256], index: 2, kind: input, shape index: {}]   ;;  %s2721_s3 = inlined_call_operand.vmem [shape: f32[16,256], index: 3, kind: input, shape index: {}]   ;;  %s2722_s5 = inlined_call_operand.vmem [shape: f32[1,128], index: 5, kind: input, shape index: {}]   ;;  %s2723_s6 = inlined_call_operand.vmem [shape: f32[8,128], index: 6, kind: output, shape index: {}]  }
   0x1   :  { %v1919_v0 = vld [vmem:[%s2717_s1 + $0x24] ss:$8 sps:$4 sm:$0xff]   ;;  %247 = vmatprep.mubr.bf16.mxu1 %v1965_v1  ;;  %599 = vmatprep.mubr.bf16.mxu0 %v1965_v1  ;;  %v1923_v3 = vld [vmem:[%s2717_s1 + $0x20] ss:$8 sps:$4 sm:$0xff]   ;;  %v1925_v5 = vld [vmem:[%s2717_s1 + $0x34] ss:$8 sps:$4 sm:$0xff]  }
   0x2   :  { %v1921_v2 = vld [vmem:[%s2717_s1 + $0x44] ss:$8 sps:$4 sm:$0xff]   ;;  %215 = vmatprep.subr.bf16.mxu1 %v1919_v0  ;;  %v1924_v4 = vld [vmem:[%s2717_s1 + $0x40] ss:$8 sps:$4 sm:$0xff]   ;;  %v1927_v6 = vld [vmem:[%s2717_s1 + $0x54] ss:$8 sps:$4 sm:$0xff]  }
   0x3   :  { %567 = vmatprep.subr.bf16.mxu0 %v1921_v2  ;;  %216 = vmatpush1.bf16.msra.mxu1 %v1923_v3  ;;  %v1929_v7 = vld [vmem:[%s2717_s1 + $0x30] ss:$8 sps:$4 sm:$0xff]   ;;  %v24_v9 = vld [vmem:[%s2718_s0] sm:$0xff]  ;;  %v25_v10 = vld [vmem:[%s2718_s0 + $0x8] sm:$0xff]  ;;  %vm717_vm3 = vsmask.f32 6400 }
   0x4   :  { %568 = vmatpush1.bf16.msra.mxu0 %v1924_v4  ;;  %217 = vmatprep.subr.bf16.mxu1 %v1925_v5  ;;  %v1930_v8 = vld [vmem:[%s2717_s1 + $0x50] ss:$8 sps:$4 sm:$0xff]   ;;  %v2036_v12 = vpack.c.bf16 %v25_v10, %v24_v9  ;;  %v1933_v14 = vld [vmem:[%s2717_s1 + $0x64] ss:$8 sps:$4 sm:$0xff]   ;;  %v29_v20 = vld [vmem:[%s2718_s0 + $0x28] sm:$0xf] }
   0x5   :  { %569 = vmatprep.subr.bf16.mxu0 %v1927_v6  ;;  %v26_v11 = vld [vmem:[%s2718_s0 + $0x10] sm:$0xf]  ;;  %v27_v15 = vld [vmem:[%s2718_s0 + $0x18] sm:$0xff]  ;;  %v28_v19 = vld [vmem:[%s2718_s0 + $0x20] sm:$0xff]  ;;  %v2062_v25 = vpack.c.bf16 %v29_v20, %v29_v20  ;;  %vm984_vm4 = vcmask 1045504   ;;  %vm1509_vm5 = vcmask 1041409  }
   0x6   :  { %v2038_v13 = vpack.c.bf16 %v26_v11, %v26_v11  ;;  %v75_v16 = vshrl.u32 %v2036_v12, 16  ;;  %v77_v17 = vshll.u32 %v2036_v12, 16  ;;  %v499_v18 = vrot.slane %v2036_v12, 1  ;;  %v1931_v23 = vld [vmem:[%s2717_s1 + $0x60] ss:$8 sps:$4 sm:$0xff]   ;;  %v30_v26 = vld [vmem:[%s2718_s0 + $0x30] sm:$0xff] }
   0x7   :  { %218 = vmatpush1.bf16.msra.mxu1 %v1929_v7  ;;  %v2060_v24 = vpack.c.bf16 %v28_v19, %v27_v15  ;;  %v31_v27 = vld [vmem:[%s2718_s0 + $0x38] sm:$0xff]  ;;  %v94_v35 = vshll.u32 %v2062_v25, 16  ;;  %v503_v37 = vrot.slane %v2062_v25, 1  ;;  %v32_v38 = vld [vmem:[%s2718_s0 + $0x40] sm:$0xf]  ;;  %v33_v48 = vld [vmem:[%s2718_s0 + $0x48] sm:$0xff] }
   0x8   :  { %570 = vmatpush1.bf16.msra.mxu0 %v1930_v8  ;;  %v82_v21 = vshll.u32 %v2038_v13, 16  ;;  %v500_v22 = vrot.slane %v2038_v13, 1  ;;  %v79_v28 = vrot.slane %v77_v17, 1  ;;  %v2075_v31 = vpack.c.bf16 %v31_v27, %v30_v26  ;;  %v1934_v41 = vld [vmem:[%s2717_s1 + $0x70] ss:$8 sps:$4 sm:$0xff]   ;;  %v36_v61 = vld [vmem:[%s2718_s0 + $0x60] sm:$0xff] }
   0x9   :  { %834 = vmatprep.subr.bf16.mxu0 %v1933_v14  ;;  %v87_v33 = vshrl.u32 %v2060_v24, 16  ;;  %v89_v34 = vshll.u32 %v2060_v24, 16  ;;  %v502_v36 = vrot.slane %v2060_v24, 1  ;;  %v1936_v42 = vld [vmem:[%s2717_s1 + $0x74] ss:$8 sps:$4 sm:$0xff]   ;;  %v96_v44 = vrot.slane %v94_v35, 1 }
   0xa   :  { %v84_v29 = vrot.slane %v82_v21, 1  ;;  %v501_v30 = vsel %vm498_vm1, %v499_v18, %v500_v22  ;;  %v80_v32 = vor.u32 %v79_v28, %v75_v16  ;;  %v2104_v45 = vpack.c.bf16 %v32_v38, %v32_v38  ;;  %v34_v49 = vld [vmem:[%s2718_s0 + $0x50] sm:$0xff]  ;;  %v1937_v55 = vld [vmem:[%s2717_s1] ss:$8 sps:$4 sm:$0xff]   ;;  %v1939_v56 = vld [vmem:[%s2717_s1 + $0x4] ss:$8 sps:$4 sm:$0xff]  }
   0xb   :  { %1711 = vmatmul.mubr.msk.bf16.vlgmr.msra.gmra.mrb[0].mxu0 %vm190_vm0, %v501_v30  ;;  %v91_v40 = vrot.slane %v89_v34, 1  ;;  %v101_v46 = vshll.u32 %v2075_v31, 16  ;;  %v504_v47 = vsel %vm498_vm1, %v502_v36, %v503_v37  ;;  %v99_v50 = vshrl.u32 %v2075_v31, 16  ;;  %v35_v59 = vld [vmem:[%s2718_s0 + $0x58] sm:$0xf]  ;;  %364 = vmatprep.subr.bf16.mxu1 %v1939_v56  ;;  %v37_v4 = vld [vmem:[%s2718_s0 + $0x68] sm:$0xff] }
   0xc   :  { %835 = vmatpush1.bf16.msra.mxu0 %v1931_v23  ;;  %609 = vmatprep.mubr.bf16.mxu0 %v1965_v1  ;;  %v85_v39 = vsel %vm73_vm2, %v80_v32, %v84_v29  ;;  %v106_v53 = vshll.u32 %v2104_v45, 16  ;;  %v2120_v54 = vpack.c.bf16 %v34_v49, %v33_v48  ;;  %v505_v57 = vrot.slane %v2075_v31, 1  ;;  %v1942_v60 = vld [vmem:[%s2717_s1 + $0x14] ss:$8 sps:$4 sm:$0xff]   ;;  %v1945_v62 = vld [vmem:[%s2717_s1 + $0x84] ss:$8 sps:$4 sm:$0xff]  }
   0xd   :  { %1683 = vmatmul.mubr.msk.bf16.vlgmr.msra.gmra.mrb[0].mxu1 %vm190_vm0, %v85_v39  ;;  %v92_v43 = vor.u32 %v91_v40, %v87_v33  ;;  %836 = vmatprep.subr.bf16.mxu0 %v1936_v42  ;;  %v103_v52 = vrot.slane %v101_v46, 1  ;;  %v506_v58 = vrot.slane %v2104_v45, 1  ;;  %v2149_v2 = vpack.c.bf16 %v35_v59, %v35_v59  ;;  %v1940_v5 = vld [vmem:[%s2717_s1 + $0x10] ss:$8 sps:$4 sm:$0xff]   ;;  %v40_v28 = vld [vmem:[%s2718_s0 + $0x80] sm:$0xff] }
   0xe   :  { %257 = vmatprep.mubr.bf16.mxu1 %v1965_v1  ;;  %v108_v0 = vrot.slane %v106_v53, 1  ;;  %v113_v3 = vshll.u32 %v2120_v54, 16  ;;  %365 = vmatpush1.bf16.msra.mxu1 %v1937_v55  ;;  %v2159_v7 = vpack.c.bf16 %v37_v4, %v36_v61  ;;  %v111_v9 = vshrl.u32 %v2120_v54, 16  ;;  %v38_v18 = vld [vmem:[%s2718_s0 + $0x70] sm:$0xf]  ;;  %v39_v27 = vld [vmem:[%s2718_s0 + $0x78] sm:$0xff] }
   0xf   :  { %v97_v51 = vsel %vm73_vm2, %v92_v43, %v96_v44  ;;  %v104_v63 = vor.u32 %v103_v52, %v99_v50  ;;  %v507_v6 = vsel %vm498_vm1, %v505_v57, %v506_v58  ;;  %366 = vmatprep.subr.bf16.mxu1 %v1942_v60  ;;  %v118_v11 = vshll.u32 %v2149_v2, 16  ;;  %v41_v40 = vld [vmem:[%s2718_s0 + $0x88] sm:$0xf]  ;;  %v42_v48 = vld [vmem:[%s2718_s0 + $0x90] sm:$0xff]  ;;  %v43_v49 = vld [vmem:[%s2718_s0 + $0x98] sm:$0xff] }
  0x10   :  { %837 = vmatpush1.bf16.msra.mxu0 %v1934_v41  ;;  %v115_v10 = vrot.slane %v113_v3, 1  ;;  %v508_v14 = vrot.slane %v2120_v54, 1  ;;  %v509_v15 = vrot.slane %v2149_v2, 1  ;;  %v2179_v22 = vpack.c.bf16 %v38_v18, %v38_v18  ;;  %v44_v60 = vld [vmem:[%s2718_s0 + $0xa0] sm:$0xf]  ;;  %v45_v4 = vld [vmem:[%s2718_s0 + $0xa8] sm:$0xff] }
  0x11   :  { %1053 = vmatprep.subr.bf16.mxu0 %v1945_v62  ;;  %v109_v8 = vsel %vm73_vm2, %v104_v63, %v108_v0  ;;  %v120_v20 = vrot.slane %v118_v11, 1  ;;  %v125_v23 = vshll.u32 %v2159_v7, 16  ;;  %v123_v29 = vshrl.u32 %v2159_v7, 16 }
  0x12   :  { %367 = vmatpush1.bf16.msra.mxu1 %v1940_v5  ;;  %v116_v19 = vor.u32 %v115_v10, %v111_v9  ;;  %v510_v26 = vsel %vm498_vm1, %v508_v14, %v509_v15  ;;  %v130_v36 = vshll.u32 %v2179_v22, 16  ;;  %v2195_v37 = vpack.c.bf16 %v40_v28, %v39_v27  ;;  %v46_v5 = vld [vmem:[%s2718_s0 + $0xb0] sm:$0xff] }
  0x13   :  { %1712 = vmatmul.mubr.msk.bf16.gmra.mrb[4].mxu0 %vm190_vm0, %v504_v47  ;;  %v127_v32 = vrot.slane %v125_v23, 1  ;;  %v511_v38 = vrot.slane %v2159_v7, 1  ;;  %v512_v39 = vrot.slane %v2179_v22, 1  ;;  %v2209_v43 = vpack.c.bf16 %v41_v40, %v41_v40 }
  0x14   :  { %619 = vmatprep.mubr.bf16.mxu0 %v1965_v1  ;;  %v121_v30 = vsel %vm73_vm2, %v116_v19, %v120_v20  ;;  %v132_v42 = vrot.slane %v130_v36, 1  ;;  %v137_v44 = vshll.u32 %v2195_v37, 16  ;;  %v2225_v57 = vpack.c.bf16 %v43_v49, %v42_v48 }
  0x15   :  { %1684 = vmatmul.mubr.msk.bf16.gmra.mrb[4].mxu1 %vm190_vm0, %v97_v51  ;;  %v128_v41 = vor.u32 %v127_v32, %v123_v29  ;;  %v513_v47 = vsel %vm498_vm1, %v511_v38, %v512_v39  ;;  %v135_v51 = vshrl.u32 %v2195_v37, 16  ;;  %v142_v56 = vshll.u32 %v2209_v43, 16 }
  0x16   :  { %267 = vmatprep.mubr.bf16.mxu1 %v1965_v1  ;;  %v139_v55 = vrot.slane %v137_v44, 1  ;;  %v514_v58 = vrot.slane %v2195_v37, 1  ;;  %v515_v59 = vrot.slane %v2209_v43, 1  ;;  %v2239_v63 = vpack.c.bf16 %v44_v60, %v44_v60 }
  0x17   :  { %v133_v52 = vsel %vm73_vm2, %v128_v41, %v132_v42  ;;  %v144_v62 = vrot.slane %v142_v56, 1  ;;  %v149_v0 = vshll.u32 %v2225_v57, 16  ;;  %v147_v14 = vshrl.u32 %v2225_v57, 16 }
  0x18   :  { %v140_v61 = vor.u32 %v139_v55, %v135_v51  ;;  %v154_v18 = vshll.u32 %v2239_v63, 16  ;;  %v517_v19 = vrot.slane %v2225_v57, 1  ;;  %v518_v20 = vrot.slane %v2239_v63, 1 }
  0x19   :  { %v151_v15 = vrot.slane %v149_v0, 1  ;;  %v721_v49 = vshrl.u32 %v2038_v13, 16  ;;  %v724_v60 = vrot.slane %v82_v21, 2  ;;  %vm1511_vm6 = vcmask 1042434  }
  0x1a   :  { %v145_v10 = vsel %vm73_vm2, %v140_v61, %v144_v62  ;;  %v156_v28 = vrot.slane %v154_v18, 1  ;;  %v519_v38 = vsel %vm498_vm1, %v517_v19, %v518_v20  ;;  %v733_v20 = vrot.slane %v94_v35, 2 }
  0x1b   :  { %1713 = vmatmul.mubr.msk.bf16.gmra.mrb[8].mxu0 %vm190_vm0, %v507_v6  ;;  %v516_v6 = vsel %vm498_vm1, %v514_v58, %v515_v59  ;;  %v152_v27 = vor.u32 %v151_v15, %v147_v14  ;;  %v719_v59 = vrot.slane %v77_v17, 2  ;;  %v723_v62 = vrot.slane %v721_v49, 1 }
  0x1c   :  { %629 = vmatprep.mubr.bf16.mxu0 %v1965_v1  ;;  %v727_v17 = vrot.slane %v87_v33, 1  ;;  %v728_v15 = vrot.slane %v89_v34, 2  ;;  %v1946_v34 = vld [vmem:[%s2717_s1 + $0x90] ss:$8 sps:$4 sm:$0xff]   ;;  %v736_v35 = vrot.slane %v99_v50, 1  ;;  %vm1513_vm7 = vcmask 1043459  }
  0x1d   :  { %1685 = vmatmul.mubr.msk.bf16.gmra.mrb[8].mxu1 %vm190_vm0, %v109_v8  ;;  %v2249_v8 = vpack.c.bf16 %v46_v5, %v45_v4  ;;  %v157_v39 = vsel %vm73_vm2, %v152_v27, %v156_v28  ;;  %v725_v5 = vor.u32 %v724_v60, %v723_v62  ;;  %v739_v28 = vshrl.u32 %v2104_v45, 16 }
  0x1e   :  { %277 = vmatprep.mubr.bf16.mxu1 %v1965_v1  ;;  %v729_v33 = vor.u32 %v728_v15, %v727_v17  ;;  %vm1515_vm8 = vcmask 1044484   ;;  %vm1517_vm9 = vcmask 1045509   ;;  %vm1519_vm10 = vcmask 1046534  }
  0x1f   :  { %v161_v32 = vshll.u32 %v2249_v8, 16  ;;  %v159_v40 = vshrl.u32 %v2249_v8, 16  ;;  %vm1521_vm11 = vcmask 1047559  }
  0x21   :  { %v163_v41 = vrot.slane %v161_v32, 1 }
  0x23   :  { %1714 = vmatmul.mubr.msk.bf16.gmra.mrb[12].mxu0 %vm190_vm0, %v510_v26  ;;  %v47_v26 = vld [vmem:[%s2718_s0 + $0xb8] sm:$0xf]  ;;  %v164_v55 = vor.u32 %v163_v41, %v159_v40  ;;  %v741_v41 = vrot.slane %v739_v28, 1 }
  0x24   :  { %639 = vmatprep.mubr.bf16.mxu0 %v1965_v1 }
  0x25   :  { %1686 = vmatmul.mubr.msk.bf16.gmra.mrb[12].mxu1 %vm190_vm0, %v121_v30  ;;  %v2269_v30 = vpack.c.bf16 %v47_v26, %v47_v26  ;;  %v1948_v26 = vld [vmem:[%s2717_s1 + $0x94] ss:$8 sps:$4 sm:$0xff]  }
  0x26   :  { %287 = vmatprep.mubr.bf16.mxu1 %v1965_v1 }
  0x27   :  { %v166_v42 = vshll.u32 %v2269_v30, 16  ;;  %v521_v48 = vrot.slane %v2269_v30, 1  ;;  %v784_v28 = vshrl.u32 %v2269_v30, 16 }
  0x29   :  { %v168_v58 = vrot.slane %v166_v42, 1 }
  0x2b   :  { %1715 = vmatmul.mubr.msk.bf16.gmra.mrb[16].mxu0 %vm190_vm0, %v513_v47  ;;  %v520_v47 = vrot.slane %v2249_v8, 1  ;;  %v169_v4 = vsel %vm73_vm2, %v164_v55, %v168_v58  ;;  %v751_v58 = vrot.slane %v118_v11, 2  ;;  %v755_v11 = vrot.slane %v125_v23, 2 }
  0x2c   :  { %649 = vmatprep.mubr.bf16.mxu0 %v1965_v1  ;;  %v763_v23 = vrot.slane %v135_v51, 1 }
  0x2d   :  { %1687 = vmatmul.mubr.msk.bf16.gmra.mrb[16].mxu1 %vm190_vm0, %v133_v52  ;;  %v718_v52 = vrot.slane %v75_v16, 1  ;;  %v522_v61 = vsel %vm498_vm1, %v520_v47, %v521_v48  ;;  %v742_v47 = vrot.slane %v106_v53, 2  ;;  %v746_v53 = vrot.slane %v113_v3, 2 }
  0x2e   :  { %297 = vmatprep.mubr.bf16.mxu1 %v1965_v1  ;;  %v754_v3 = vrot.slane %v123_v29, 1 }
  0x2f   :  { %v720_v16 = vor.u32 %v719_v59, %v718_v52  ;;  %v743_v49 = vor.u32 %v742_v47, %v741_v41  ;;  %v748_v52 = vshrl.u32 %v2149_v2, 16  ;;  %v988_v47 = vrot.slane %v2060_v24, 2 }
  0x31   :  { %v726_v21 = vsel %vm717_vm3, %v720_v16, %v725_v5  ;;  %v750_v55 = vrot.slane %v748_v52, 1  ;;  %v756_v16 = vor.u32 %v755_v11, %v754_v3  ;;  %v1955_v11 = vld [vmem:[%s2719_s4 + $0x58] sm:$0xff]  }
  0x33   :  { %1716 = vmatmul.mubr.msk.bf16.gmra.mrb[20].mxu0 %vm190_vm0, %v516_v6  ;;  %v730_v6 = vshrl.u32 %v2062_v25, 16  ;;  %v752_v60 = vor.u32 %v751_v58, %v750_v55 }
  0x34   :  { %659 = vmatprep.mubr.bf16.mxu0 %v1965_v1 }
  0x35   :  { %1688 = vmatmul.mubr.msk.bf16.gmra.mrb[20].mxu1 %vm190_vm0, %v145_v10  ;;  %v1943_v10 = vld [vmem:[%s2717_s1 + $0x80] ss:$8 sps:$4 sm:$0xff]   ;;  %v732_v19 = vrot.slane %v730_v6, 1  ;;  %v766_v6 = vshrl.u32 %v2209_v43, 16 }
  0x36   :  { %307 = vmatprep.mubr.bf16.mxu1 %v1965_v1 }
  0x37   :  { %v734_v27 = vor.u32 %v733_v20, %v732_v19  ;;  %v768_v17 = vrot.slane %v766_v6, 1  ;;  %v775_v19 = vshrl.u32 %v2239_v63, 16  ;;  %v1957_v6 = vld [vmem:[%s2719_s4 + $0x60] sm:$0xff]  }
  0x39   :  { %v777_v20 = vrot.slane %v775_v19, 1  ;;  %v1961_v19 = vld [vmem:[%s2719_s4 + $0x70] sm:$0xff]  }
  0x3b   :  { %1717 = vmatmul.mubr.msk.bf16.gmra.mrb[24].mxu0 %vm190_vm0, %v519_v38  ;;  %v735_v38 = vsel %vm717_vm3, %v729_v33, %v734_v27 }
  0x3c   :  { %669 = vmatprep.mubr.bf16.mxu0 %v1965_v1 }
  0x3d   :  { %1689 = vmatmul.mubr.msk.bf16.gmra.mrb[24].mxu1 %vm190_vm0, %v157_v39  ;;  %v737_v39 = vrot.slane %v101_v46, 2  ;;  %v745_v46 = vrot.slane %v111_v9, 1 }
  0x3e   :  { %317 = vmatprep.mubr.bf16.mxu1 %v1965_v1 }
  0x3f   :  { %v738_v48 = vor.u32 %v737_v39, %v736_v35  ;;  %v747_v59 = vor.u32 %v746_v53, %v745_v46  ;;  %v787_v35 = vrot.slane %v166_v42, 2  ;;  %v986_v42 = vrot.slane %v2038_v13, 2 }
  0x40   :  { %v992_v13 = vrot.slane %v2104_v45, 2  ;;  %v998_v45 = vrot.slane %v2179_v22, 2 }
  0x41   :  { %v744_v50 = vsel %vm717_vm3, %v738_v48, %v743_v49  ;;  %v753_v9 = vsel %vm717_vm3, %v747_v59, %v752_v60  ;;  %v989_v48 = vrot.slane %v2062_v25, 2  ;;  %v995_v25 = vrot.slane %v2149_v2, 2  ;;  %v1953_v59 = vld [vmem:[%s2719_s4 + $0x50] sm:$0xff]  }
  0x42   :  { %v1001_v2 = vrot.slane %v2209_v43, 2  ;;  %v1007_v43 = vrot.slane %v2269_v30, 2 }
  0x43   :  { %1718 = vmatmul.mubr.msk.bf16.gmra.mrb[28].mxu0 %vm190_vm0, %v522_v61  ;;  %v757_v61 = vshrl.u32 %v2179_v22, 16  ;;  %v990_v49 = vsel %vm984_vm4, %v988_v47, %v989_v48  ;;  %v1004_v22 = vrot.slane %v2239_v63, 2  ;;  %v1950_v63 = vld [vmem:[%s2719_s4] sm:$0xff]  }
  0x44   :  { %866 = vmatprep.mubr.bf16.mxu0 %v1965_v1 }
  0x45   :  { %1690 = vmatmul.mubr.msk.bf16.gmra.mrb[28].mxu1 %vm190_vm0, %v169_v4  ;;  %v759_v62 = vrot.slane %v757_v61, 1  ;;  %v760_v4 = vrot.slane %v130_v36, 2  ;;  %v764_v36 = vrot.slane %v137_v44, 2  ;;  %v772_v44 = vrot.slane %v147_v14, 1  ;;  %v1954_v61 = vld [vmem:[%s2719_s4 + $0x10] sm:$0xff]  }
  0x46   :  { %396 = vmatprep.mubr.bf16.mxu1 %v1965_v1 }
  0x47   :  { %v761_v5 = vor.u32 %v760_v4, %v759_v62  ;;  %v1956_v62 = vld [vmem:[%s2719_s4 + $0x18] sm:$0xff]  }
  0x49   :  { %v762_v29 = vsel %vm717_vm3, %v756_v16, %v761_v5 }
  0x4b   :  { %1727 = vmatmul.mubr.msk.bf16.vlgmr.msra.gmra.mrb[0].mxu0 %vm190_vm0, %v726_v21  ;;  %v769_v21 = vrot.slane %v142_v56, 2  ;;  %v773_v56 = vrot.slane %v149_v0, 2  ;;  %v781_v0 = vrot.slane %v159_v40, 1 }
  0x4c   :  { %1054 = vmatpush1.bf16.msra.mxu0 %v1943_v10  ;;  %876 = vmatprep.mubr.bf16.mxu0 %v1965_v1  ;;  %v765_v10 = vor.u32 %v764_v36, %v763_v23  ;;  %v1959_v36 = vld [vmem:[%s2719_s4 + $0x68] sm:$0xff]  }
  0x4d   :  { %1055 = vmatprep.subr.bf16.mxu0 %v1948_v26  ;;  %1695 = vmatmul.mubr.msk.bf16.vlgmr.msra.gmra.mrb[0].mxu1 %vm190_vm0, %v2036_v12  ;;  %v770_v15 = vor.u32 %v769_v21, %v768_v17  ;;  %v778_v26 = vrot.slane %v154_v18, 2  ;;  %v774_v33 = vor.u32 %v773_v56, %v772_v44  ;;  %v782_v18 = vrot.slane %v161_v32, 2  ;;  %v1960_v17 = vld [vmem:[%s2719_s4 + $0x28] sm:$0xff]   ;;  %v1963_v56 = vld [vmem:[%s2719_s4 + $0x78] sm:$0xff]  }
  0x4e   :  { %406 = vmatprep.mubr.bf16.mxu1 %v1965_v1  ;;  %v985_v32 = vrot.slane %v2036_v12, 2  ;;  %v991_v12 = vrot.slane %v2075_v31, 2 }
  0x4f   :  { %v771_v51 = vsel %vm717_vm3, %v765_v10, %v770_v15  ;;  %v779_v27 = vor.u32 %v778_v26, %v777_v20  ;;  %v1964_v20 = vld [vmem:[%s2719_s4 + $0x38] sm:$0xff]  }
  0x50   :  { %1056 = vmatpush1.bf16.msra.mxu0 %v1946_v34  ;;  %v786_v34 = vrot.slane %v784_v28, 1  ;;  %v987_v41 = vsel %vm984_vm4, %v985_v32, %v986_v42  ;;  %v993_v52 = vsel %vm984_vm4, %v991_v12, %v992_v13  ;;  %v1200_v42 = vlaneseq }
  0x51   :  { %v780_v14 = vsel %vm717_vm3, %v774_v33, %v779_v27 }
  0x52   :  { %v788_v39 = vor.u32 %v787_v35, %v786_v34 }
  0x53   :  { %1728 = vmatmul.mubr.msk.bf16.gmra.mrb[4].mxu0 %vm190_vm0, %v735_v38  ;;  %v783_v38 = vor.u32 %v782_v18, %v781_v0 }
  0x54   :  { %886 = vmatprep.mubr.bf16.mxu0 %v1965_v1 }
  0x55   :  { %1696 = vmatmul.mubr.msk.bf16.gmra.mrb[4].mxu1 %vm190_vm0, %v2060_v24  ;;  %v789_v40 = vsel %vm717_vm3, %v783_v38, %v788_v39  ;;  %v994_v24 = vrot.slane %v2120_v54, 2 }
  0x56   :  { %416 = vmatprep.mubr.bf16.mxu1 %v1965_v1 }
  0x57   :  { %v996_v46 = vsel %vm984_vm4, %v994_v24, %v995_v25  ;;  %v1198_v24 = vld [vmem:[%s2720_s2] sm:$0x3] }
  0x5b   :  { %1729 = vmatmul.mubr.msk.bf16.gmra.mrb[8].mxu0 %vm190_vm0, %v744_v50 }
  0x5c   :  { %896 = vmatprep.mubr.bf16.mxu0 %v1965_v1 }
  0x5d   :  { %1697 = vmatmul.mubr.msk.bf16.gmra.mrb[8].mxu1 %vm190_vm0, %v2075_v31  ;;  %v997_v31 = vrot.slane %v2159_v7, 2 }
  0x5e   :  { %426 = vmatprep.mubr.bf16.mxu1 %v1965_v1 }
  0x5f   :  { %v999_v50 = vsel %vm984_vm4, %v997_v31, %v998_v45 }
  0x63   :  { %1730 = vmatmul.mubr.msk.bf16.gmra.mrb[12].mxu0 %vm190_vm0, %v753_v9 }
  0x64   :  { %906 = vmatprep.mubr.bf16.mxu0 %v1965_v1 }
  0x65   :  { %1698 = vmatmul.mubr.msk.bf16.gmra.mrb[12].mxu1 %vm190_vm0, %v2120_v54  ;;  %v1000_v54 = vrot.slane %v2195_v37, 2 }
  0x66   :  { %436 = vmatprep.mubr.bf16.mxu1 %v1965_v1 }
  0x67   :  { %v1002_v53 = vsel %vm984_vm4, %v1000_v54, %v1001_v2 }
  0x6b   :  { %1731 = vmatmul.mubr.msk.bf16.gmra.mrb[16].mxu0 %vm190_vm0, %v762_v29  ;;  %v1958_v29 = vld [vmem:[%s2719_s4 + $0x20] sm:$0xff]  }
  0x6c   :  { %916 = vmatprep.mubr.bf16.mxu0 %v1965_v1 }
  0x6d   :  { %1699 = vmatmul.mubr.msk.bf16.gmra.mrb[16].mxu1 %vm190_vm0, %v2159_v7  ;;  %v1003_v7 = vrot.slane %v2225_v57, 2 }
  0x6e   :  { %446 = vmatprep.mubr.bf16.mxu1 %v1965_v1 }
  0x6f   :  { %v1005_v55 = vsel %vm984_vm4, %v1003_v7, %v1004_v22 }
  0x73   :  { %1732 = vmatmul.mubr.msk.bf16.gmra.mrb[20].mxu0 %vm190_vm0, %v771_v51  ;;  %v1962_v51 = vld [vmem:[%s2719_s4 + $0x30] sm:$0xff]  }
  0x74   :  { %926 = vmatprep.mubr.bf16.mxu0 %v1965_v1 }
  0x75   :  { %1700 = vmatmul.mubr.msk.bf16.gmra.mrb[20].mxu1 %vm190_vm0, %v2195_v37  ;;  %v1006_v37 = vrot.slane %v2249_v8, 2 }
  0x76   :  { %456 = vmatprep.mubr.bf16.mxu1 %v1965_v1 }
  0x77   :  { %v1008_v58 = vsel %vm984_vm4, %v1006_v37, %v1007_v43 }
  0x7b   :  { %1733 = vmatmul.mubr.msk.bf16.gmra.mrb[24].mxu0 %vm190_vm0, %v780_v14 }
  0x7c   :  { %936 = vmatprep.mubr.bf16.mxu0 %v1965_v1 }
  0x7d   :  { %1701 = vmatmul.mubr.msk.bf16.gmra.mrb[24].mxu1 %vm190_vm0, %v2225_v57  ;;  %v1949_v57 = vld [vmem:[%s2719_s4 + $0x40] sm:$0xff]  }
  0x7e   :  { %466 = vmatprep.mubr.bf16.mxu1 %v1965_v1  ;;  %1768 = vmatprep.subr.bf16.mxu1 %v1949_v57 }
  0x7f   :  { %1769 = vmatpush3.bf16.msra.mxu1 %v1950_v63 }
  0x83   :  { %1734 = vmatmul.mubr.msk.bf16.gmra.mrb[28].mxu0 %vm190_vm0, %v789_v40 }
  0x84   :  { %1085 = vmatprep.mubr.bf16.mxu0 %v1965_v1 }
  0x85   :  { %1702 = vmatmul.mubr.msk.bf16.gmra.mrb[28].mxu1 %vm190_vm0, %v2249_v8  ;;  %v1952_v8 = vld [vmem:[%s2719_s4 + $0x8] sm:$0xff]  }
  0x8b   :  { %1743 = vmatmul.mubr.msk.bf16.vlgmr.msra.gmra.mrb[0].mxu0 %vm190_vm0, %v987_v41 }
  0x8c   :  { %1095 = vmatprep.mubr.bf16.mxu0 %v1965_v1 }
  0x93   :  { %1744 = vmatmul.mubr.msk.bf16.gmra.mrb[4].mxu0 %vm190_vm0, %v990_v49  ;;  %v1201_v49 = vshrl.u32 %v1200_v42, 7 }
  0x94   :  { %1105 = vmatprep.mubr.bf16.mxu0 %v1965_v1 }
  0x95   :  { %v1202_v13 = vsub.s32 0, %v1201_v49  ;;  %v1206_v25 = vsub.s32 1, %v1201_v49 }
  0x97   :  { %v2560_v45 = vrot.slane %v1198_v24, %v1202_v13  ;;  %v2562_v54 = vrot.slane %v1198_v24, %v1206_v25 }
  0x9b   :  { %1745 = vmatmul.mubr.msk.bf16.gmra.mrb[8].mxu0 %vm190_vm0, %v993_v52 }
  0x9c   :  { %1115 = vmatprep.mubr.bf16.mxu0 %v1965_v1 }
  0xa3   :  { %1746 = vmatmul.mubr.msk.bf16.gmra.mrb[12].mxu0 %vm190_vm0, %v996_v46 }
  0xa4   :  { %1125 = vmatprep.mubr.bf16.mxu0 %v1965_v1 }
  0xab   :  { %1747 = vmatmul.mubr.msk.bf16.gmra.mrb[16].mxu0 %vm190_vm0, %v999_v50 }
  0xac   :  { %1135 = vmatprep.mubr.bf16.mxu0 %v1965_v1 }
  0xb3   :  { %1748 = vmatmul.mubr.msk.bf16.gmra.mrb[20].mxu0 %vm190_vm0, %v1002_v53 }
  0xb4   :  { %1145 = vmatprep.mubr.bf16.mxu0 %v1965_v1 }
  0xbb   :  { %1749 = vmatmul.mubr.msk.bf16.gmra.mrb[24].mxu0 %vm190_vm0, %v1005_v55 }
  0xbc   :  { %1155 = vmatprep.mubr.bf16.mxu0 %v1965_v1  ;;  %v1951_v1 = vld [vmem:[%s2719_s4 + $0x48] sm:$0xff]  }
  0xbd   :  { %1770 = vmatprep.subr.bf16.mxu1 %v1951_v1 }
  0xbe   :  { %1771 = vmatpush3.bf16.msra.mxu1 %v1952_v8  ;;  %v2574_v8 = vld [vmem:[%s2721_s3] sm:$0xff] }
  0xbf   :  { %1772 = vmatprep.subr.bf16.mxu1 %v1953_v59  ;;  %v2579_v59 = vld [vmem:[%s2721_s3 + $0x10] sm:$0xff] }
  0xc2   :  { %1773 = vmatpush3.bf16.msra.mxu1 %v1954_v61  ;;  %v2585_v61 = vld [vmem:[%s2721_s3 + $0x8] sm:$0xff] }
  0xc3   :  { %1750 = vmatmul.mubr.msk.bf16.gmra.mrb[28].mxu0 %vm190_vm0, %v1008_v58  ;;  %1774 = vmatprep.subr.bf16.mxu1 %v1955_v11 }
  0xc6   :  { %1775 = vmatpush3.bf16.msra.mxu1 %v1956_v62 }
  0xc7   :  { %1776 = vmatprep.subr.bf16.mxu1 %v1957_v6 }
  0xca   :  { %1777 = vmatpush3.bf16.msra.mxu1 %v1958_v29 }
  0xcb   :  { %1778 = vmatprep.subr.bf16.mxu1 %v1959_v36 }
  0xce   :  { %1779 = vmatpush3.bf16.msra.mxu1 %v1960_v17 }
  0xcf   :  { %1780 = vmatprep.subr.bf16.mxu1 %v1961_v19 }
  0xd2   :  { %1781 = vmatpush3.bf16.msra.mxu1 %v1962_v51 }
  0xd3   :  { %1782 = vmatprep.subr.bf16.mxu1 %v1963_v56 }
  0xd6   :  { %1783 = vmatpush3.bf16.msra.mxu1 %v1964_v20 }
 0x120   :  { %v2457_v30 = vpop.f32.mrb[0].mxu1 }
 0x121   :  { %v2462_v60 = vpop.f32.mrb[1].mxu1 }
 0x122   :  { %v2467_v3 = vpop.f32.mrb[2].mxu1 }
 0x123   :  { %v2469_v9 = vpop.f32.mrb[3].mxu1 }
 0x128   :  { %v2477_v4 = vpop.f32.mrb[4].mxu1 }
 0x129   :  { %v2479_v16 = vpop.f32.mrb[5].mxu1 }
 0x12a   :  { %v2481_v5 = vpop.f32.mrb[6].mxu1 }
 0x12b   :  { %v2486_v23 = vpop.f32.mrb[7].mxu1 }
 0x130   :  { %v2497_v21 = vpop.f32.mrb[8].mxu1 }
 0x131   :  { %v2499_v10 = vpop.f32.mrb[9].mxu1 }
 0x132   :  { %v2501_v15 = vpop.f32.mrb[10].mxu1 }
 0x133   :  { %v2506_v44 = vpop.f32.mrb[11].mxu1 }
 0x138   :  { %v2517_v26 = vpop.f32.mrb[12].mxu1 }
 0x139   :  { %v2519_v33 = vpop.f32.mrb[13].mxu1 }
 0x13a   :  { %v2521_v27 = vpop.f32.mrb[14].mxu1 }
 0x13b   :  { %v2523_v28 = vpop.f32.mrb[15].mxu1 }
 0x140   :  { %v2525_v0 = vpop.f32.mrb[16].mxu1 }
 0x141   :  { %v2527_v14 = vpop.f32.mrb[17].mxu1 }
 0x142   :  { %v2529_v18 = vpop.f32.mrb[18].mxu1 }
 0x143   :  { %v2531_v34 = vpop.f32.mrb[19].mxu1 }
 0x148   :  { %v2533_v35 = vpop.f32.mrb[20].mxu1 }
 0x149   :  { %v2535_v38 = vpop.f32.mrb[21].mxu1 }
 0x14a   :  { %v2537_v39 = vpop.f32.mrb[22].mxu1 }
 0x14b   :  { %v2539_v40 = vpop.f32.mrb[23].mxu1 }
 0x150   :  { %v2541_v32 = vpop.f32.mrb[24].mxu1 }
 0x151   :  { %v2543_v41 = vpop.f32.mrb[25].mxu1 }
 0x152   :  { %v2545_v47 = vpop.f32.mrb[26].mxu1 }
 0x153   :  { %v2547_v48 = vpop.f32.mrb[27].mxu1 }
 0x158   :  { %v2549_v12 = vpop.f32.mrb[28].mxu1 }
 0x159   :  { %v2551_v52 = vpop.f32.mrb[29].mxu1 }
 0x15a   :  { %v2556_v46 = vpop.f32.mrb[30].mxu1 }
 0x15b   :  { %v2558_v31 = vpop.f32.mrb[31].mxu1 }
 0x15e   :  { %v1087_v50 = vpop.f32.mrb[0].mxu0 }
 0x15f   :  { %v1790_v2 = vadd.f32 %v1087_v50, %v2457_v30  ;;  %v1089_v53 = vpop.f32.mrb[1].mxu0 }
 0x160   :  { %v1791_v7 = vadd.f32 %v1089_v53, %v2462_v60  ;;  %v1091_v22 = vpop.f32.mrb[2].mxu0 }
 0x161   :  { %v1210_v55 = vadd.f32 %v1790_v2, %v2560_v45  ;;  %v1792_v37 = vadd.f32 %v1091_v22, %v2467_v3  ;;  %v1093_v43 = vpop.f32.mrb[3].mxu0 }
 0x162   :  { %v1211_v58 = vadd.f32 %v1791_v7, %v2562_v54  ;;  %v1793_v57 = vadd.f32 %v1093_v43, %v2469_v9  ;;  %v2590_v9 = vld [vmem:[%s2721_s3 + $0x18] sm:$0xff] }
 0x163   :  { %v1242_v63 = vmax.f32 %v1210_v55, 0.0  ;;  %v1212_v1 = vadd.f32 %v1792_v37, %v2560_v45 }
 0x164   :  { %v1243_v30 = vmax.f32 %v1211_v58, 0.0  ;;  %v1213_v60 = vadd.f32 %v1793_v57, %v2562_v54 }
 0x165   :  { %v1244_v3 = vmax.f32 %v1212_v1, 0.0  ;;  %v1278_v6 = vmul.f32 %v2574_v8, %v1242_v63 }
 0x166   :  { %v1245_v11 = vmax.f32 %v1213_v60, 0.0  ;;  %v1097_v62 = vpop.f32.mrb[4].mxu0  ;;  %v1279_v19 = vmul.f32 %v2585_v61, %v1243_v30 }
 0x167   :  { %v1280_v29 = vmul.f32 %v2579_v59, %v1244_v3  ;;  %v1794_v36 = vadd.f32 %v1097_v62, %v2477_v4  ;;  %v1099_v17 = vpop.f32.mrb[5].mxu0 }
 0x168   :  { %v1281_v51 = vmul.f32 %v2590_v9, %v1245_v11  ;;  %v1795_v56 = vadd.f32 %v1099_v17, %v2479_v16  ;;  %v1101_v20 = vpop.f32.mrb[6].mxu0 }
 0x169   :  { %v1310_v42 = vmax.f32 %v1278_v6, %v1280_v29  ;;  %v1214_v49 = vadd.f32 %v1794_v36, %v2560_v45  ;;  %v1796_v13 = vadd.f32 %v1101_v20, %v2481_v5  ;;  %v1103_v24 = vpop.f32.mrb[7].mxu0 }
 0x16a   :  { %v1317_v25 = vmax.f32 %v1279_v19, %v1281_v51  ;;  %v1215_v50 = vadd.f32 %v1795_v56, %v2562_v54  ;;  %v1797_v2 = vadd.f32 %v1103_v24, %v2486_v23 }
 0x16b   :  { %v1311_v4 = vrot.slane %v1310_v42, 4  ;;  %v1246_v53 = vmax.f32 %v1214_v49, 0.0  ;;  %v1216_v7 = vadd.f32 %v1796_v13, %v2560_v45 }
 0x16c   :  { %v1318_v22 = vrot.slane %v1317_v25, 4  ;;  %v1247_v55 = vmax.f32 %v1215_v50, 0.0  ;;  %v1217_v16 = vadd.f32 %v1797_v2, %v2562_v54 }
 0x16d   :  { %v1312_v37 = vmax.f32 %v1310_v42, %v1311_v4  ;;  %v1248_v43 = vmax.f32 %v1216_v7, 0.0  ;;  %v1282_v1 = vmul.f32 %v2574_v8, %v1246_v53 }
 0x16e   :  { %v1319_v58 = vmax.f32 %v1317_v25, %v1318_v22  ;;  %v1249_v57 = vmax.f32 %v1217_v16, 0.0  ;;  %v1107_v63 = vpop.f32.mrb[8].mxu0  ;;  %v1283_v11 = vmul.f32 %v2585_v61, %v1247_v55 }
 0x16f   :  { %v1313_v5 = vrot.slane %v1312_v37, 2  ;;  %v1284_v30 = vmul.f32 %v2579_v59, %v1248_v43  ;;  %v1798_v23 = vadd.f32 %v1107_v63, %v2497_v21  ;;  %v1109_v60 = vpop.f32.mrb[9].mxu0 }
 0x170   :  { %v1320_v3 = vrot.slane %v1319_v58, 2  ;;  %v1285_v62 = vmul.f32 %v2590_v9, %v1249_v57  ;;  %v1799_v6 = vadd.f32 %v1109_v60, %v2499_v10  ;;  %v1111_v29 = vpop.f32.mrb[10].mxu0 }
 0x171   :  { %v1314_v36 = vmax.f32 %v1312_v37, %v1313_v5  ;;  %v1324_v17 = vmax.f32 %v1282_v1, %v1284_v30  ;;  %v1218_v19 = vadd.f32 %v1798_v23, %v2560_v45  ;;  %v1800_v51 = vadd.f32 %v1111_v29, %v2501_v15  ;;  %v1113_v56 = vpop.f32.mrb[11].mxu0 }
 0x172   :  { %v1321_v20 = vmax.f32 %v1319_v58, %v1320_v3  ;;  %v1331_v42 = vmax.f32 %v1283_v11, %v1285_v62  ;;  %v1219_v21 = vadd.f32 %v1799_v6, %v2562_v54  ;;  %v1801_v49 = vadd.f32 %v1113_v56, %v2506_v44 }
 0x173   :  { %v1315_v13 = vrot.slane %v1314_v36, 1  ;;  %v1325_v24 = vrot.slane %v1324_v17, 4  ;;  %v1250_v25 = vmax.f32 %v1218_v19, 0.0  ;;  %v1220_v50 = vadd.f32 %v1800_v51, %v2560_v45 }
 0x174   :  { %v1322_v10 = vrot.slane %v1321_v20, 1  ;;  %v1332_v2 = vrot.slane %v1331_v42, 4  ;;  %v1251_v4 = vmax.f32 %v1219_v21, 0.0  ;;  %v1221_v53 = vadd.f32 %v1801_v49, %v2562_v54 }
 0x175   :  { %v1316_v7 = vmax.f32 %v1314_v36, %v1315_v13  ;;  %v1326_v22 = vmax.f32 %v1324_v17, %v1325_v24  ;;  %v1286_v15 = vmul.f32 %v2574_v8, %v1250_v25  ;;  %v1252_v55 = vmax.f32 %v1220_v50, 0.0 }
 0x176   :  { %v1323_v16 = vmax.f32 %v1321_v20, %v1322_v10  ;;  %v1333_v37 = vmax.f32 %v1331_v42, %v1332_v2  ;;  %v1287_v43 = vmul.f32 %v2585_v61, %v1251_v4  ;;  %v1253_v44 = vmax.f32 %v1221_v53, 0.0  ;;  %v1117_v58 = vpop.f32.mrb[12].mxu0 }
 0x177   :  { %v1422_v57 = vpack.c.bf16 %v1316_v7, %v1316_v7  ;;  %v1327_v63 = vrot.slane %v1326_v22, 2  ;;  %v1288_v5 = vmul.f32 %v2579_v59, %v1252_v55  ;;  %v1802_v1 = vadd.f32 %v1117_v58, %v2517_v26  ;;  %v1119_v30 = vpop.f32.mrb[13].mxu0 }
 0x178   :  { %v1423_v23 = vpack.c.bf16 %v1323_v16, %v1323_v16  ;;  %v1334_v60 = vrot.slane %v1333_v37, 2  ;;  %v1289_v3 = vmul.f32 %v2590_v9, %v1253_v44  ;;  %v1803_v11 = vadd.f32 %v1119_v30, %v2519_v33  ;;  %v1121_v62 = vpop.f32.mrb[14].mxu0 }
 0x179   :  { %v1493_v6 = vunpack.c.l.b16 %v1422_v57  ;;  %v1328_v29 = vmax.f32 %v1326_v22, %v1327_v63  ;;  %v1338_v36 = vmax.f32 %v1286_v15, %v1288_v5  ;;  %v1222_v17 = vadd.f32 %v1802_v1, %v2560_v45  ;;  %v1123_v19 = vpop.f32.mrb[15].mxu0 }
 0x17a   :  { %v2623_v51 = vunpack.c.l.b16 %v1423_v23  ;;  %v1335_v56 = vmax.f32 %v1333_v37, %v1334_v60  ;;  %v1345_v20 = vmax.f32 %v1287_v43, %v1289_v3  ;;  %v1223_v26 = vadd.f32 %v1803_v11, %v2562_v54 }
 0x17b   :  { %v1329_v42 = vrot.slane %v1328_v29, 1  ;;  %v1339_v21 = vrot.slane %v1338_v36, 4  ;;  %v1254_v49 = vmax.f32 %v1222_v17, 0.0  ;;  %v1804_v13 = vadd.f32 %v1121_v62, %v2521_v27 }
 0x17c   :  { %v1336_v24 = vrot.slane %v1335_v56, 1  ;;  %v1346_v33 = vrot.slane %v1345_v20, 4  ;;  %v1255_v25 = vmax.f32 %v1223_v26, 0.0  ;;  %v1805_v50 = vadd.f32 %v1123_v19, %v2523_v28 }
 0x17d   :  { %v1330_v10 = vmax.f32 %v1328_v29, %v1329_v42  ;;  %v1340_v2 = vmax.f32 %v1338_v36, %v1339_v21  ;;  %v1290_v4 = vmul.f32 %v2574_v8, %v1254_v49  ;;  %v1224_v53 = vadd.f32 %v1804_v13, %v2560_v45 }
 0x17e   :  { %v1337_v7 = vmax.f32 %v1335_v56, %v1336_v24  ;;  %v1347_v22 = vmax.f32 %v1345_v20, %v1346_v33  ;;  %v1291_v15 = vmul.f32 %v2585_v61, %v1255_v25  ;;  %v1225_v55 = vadd.f32 %v1805_v50, %v2562_v54  ;;  %v1127_v16 = vpop.f32.mrb[16].mxu0 }
 0x17f   :  { %v1424_v37 = vpack.c.bf16 %v1330_v10, %v1330_v10  ;;  %v1341_v27 = vrot.slane %v1340_v2, 2  ;;  %v1256_v43 = vmax.f32 %v1224_v53, 0.0  ;;  %v1806_v44 = vadd.f32 %v1127_v16, %v2525_v0  ;;  %v1129_v58 = vpop.f32.mrb[17].mxu0 }
 0x180   :  { %v1425_v28 = vpack.c.bf16 %v1337_v7, %v1337_v7  ;;  %v1348_v57 = vrot.slane %v1347_v22, 2  ;;  %v1257_v63 = vmax.f32 %v1225_v55, 0.0  ;;  %v1807_v5 = vadd.f32 %v1129_v58, %v2527_v14  ;;  %v1131_v1 = vpop.f32.mrb[18].mxu0 }
 0x181   :  { %v1495_v30 = vunpack.c.l.b16 %v1424_v37  ;;  %v1342_v23 = vmax.f32 %v1340_v2, %v1341_v27  ;;  %v1292_v60 = vmul.f32 %v2579_v59, %v1256_v43  ;;  %v1226_v3 = vadd.f32 %v1806_v44, %v2560_v45  ;;  %v1133_v11 = vpop.f32.mrb[19].mxu0 }
 0x182   :  { %v2636_v62 = vunpack.c.l.b16 %v1425_v28  ;;  %v1349_v29 = vmax.f32 %v1347_v22, %v1348_v57  ;;  %v1293_v36 = vmul.f32 %v2590_v9, %v1257_v63  ;;  %v1227_v0 = vadd.f32 %v1807_v5, %v2562_v54 }
 0x183   :  { %v2641_v17 = vsel %vm1509_vm5, %v1495_v30, %v1493_v6  ;;  %v1343_v19 = vrot.slane %v1342_v23, 1  ;;  %v1352_v14 = vmax.f32 %v1290_v4, %v1292_v60  ;;  %v1258_v56 = vmax.f32 %v1226_v3, 0.0 }
 0x184   :  { %v1350_v20 = vrot.slane %v1349_v29, 1  ;;  %v1359_v26 = vmax.f32 %v1291_v15, %v1293_v36  ;;  %v1259_v42 = vmax.f32 %v1227_v0, 0.0  ;;  %v1808_v21 = vadd.f32 %v1131_v1, %v2529_v18 }
 0x185   :  { %v1344_v49 = vmax.f32 %v1342_v23, %v1343_v19  ;;  %v1353_v13 = vrot.slane %v1352_v14, 4  ;;  %v1294_v24 = vmul.f32 %v2574_v8, %v1258_v56  ;;  %v1809_v33 = vadd.f32 %v1133_v11, %v2531_v34 }
 0x186   :  { %v1351_v25 = vmax.f32 %v1349_v29, %v1350_v20  ;;  %v1360_v50 = vrot.slane %v1359_v26, 4  ;;  %v1295_v10 = vmul.f32 %v2585_v61, %v1259_v42  ;;  %v1228_v6 = vadd.f32 %v1808_v21, %v2560_v45  ;;  %v1137_v2 = vpop.f32.mrb[20].mxu0 }
 0x187   :  { %v1426_v4 = vpack.c.bf16 %v1344_v49, %v1344_v49  ;;  %v1354_v53 = vmax.f32 %v1352_v14, %v1353_v13  ;;  %v1229_v7 = vadd.f32 %v1809_v33, %v2562_v54  ;;  %v1810_v22 = vadd.f32 %v1137_v2, %v2533_v35  ;;  %v1139_v18 = vpop.f32.mrb[21].mxu0 }
 0x188   :  { %v1427_v15 = vpack.c.bf16 %v1351_v25, %v1351_v25  ;;  %v1361_v55 = vmax.f32 %v1359_v26, %v1360_v50  ;;  %v1260_v16 = vmax.f32 %v1228_v6, 0.0  ;;  %v1811_v37 = vadd.f32 %v1139_v18, %v2535_v38  ;;  %v1141_v34 = vpop.f32.mrb[22].mxu0 }
 0x189   :  { %v2651_v27 = vunpack.c.l.b16 %v1426_v4  ;;  %v1355_v43 = vrot.slane %v1354_v53, 2  ;;  %v1261_v44 = vmax.f32 %v1229_v7, 0.0  ;;  %v1230_v58 = vadd.f32 %v1810_v22, %v2560_v45  ;;  %v1143_v28 = vpop.f32.mrb[23].mxu0 }
 0x18a   :  { %v2654_v57 = vunpack.c.l.b16 %v1427_v15  ;;  %v1362_v63 = vrot.slane %v1361_v55, 2  ;;  %v1296_v5 = vmul.f32 %v2579_v59, %v1260_v16  ;;  %v1231_v35 = vadd.f32 %v1811_v37, %v2562_v54 }
 0x18b   :  { %v1356_v1 = vmax.f32 %v1354_v53, %v1355_v43  ;;  %v1297_v30 = vmul.f32 %v2590_v9, %v1261_v44  ;;  %v1262_v23 = vmax.f32 %v1230_v58, 0.0  ;;  %v1812_v38 = vadd.f32 %v1141_v34, %v2537_v39 }
 0x18c   :  { %v1363_v60 = vmax.f32 %v1361_v55, %v1362_v63  ;;  %v1366_v3 = vmax.f32 %v1294_v24, %v1296_v5  ;;  %v1263_v11 = vmax.f32 %v1231_v35, 0.0  ;;  %v1813_v29 = vadd.f32 %v1143_v28, %v2539_v40 }
 0x18d   :  { %v1357_v36 = vrot.slane %v1356_v1, 1  ;;  %v1373_v0 = vmax.f32 %v1295_v10, %v1297_v30  ;;  %v1298_v19 = vmul.f32 %v2574_v8, %v1262_v23  ;;  %v1232_v14 = vadd.f32 %v1812_v38, %v2560_v45 }
 0x18e   :  { %v1364_v56 = vrot.slane %v1363_v60, 1  ;;  %v1367_v20 = vrot.slane %v1366_v3, 4  ;;  %v1299_v26 = vmul.f32 %v2585_v61, %v1263_v11  ;;  %v1233_v42 = vadd.f32 %v1813_v29, %v2562_v54  ;;  %v1147_v21 = vpop.f32.mrb[24].mxu0 }
 0x18f   :  { %v1358_v49 = vmax.f32 %v1356_v1, %v1357_v36  ;;  %v1374_v39 = vrot.slane %v1373_v0, 4  ;;  %v1264_v13 = vmax.f32 %v1232_v14, 0.0  ;;  %v1814_v24 = vadd.f32 %v1147_v21, %v2541_v32  ;;  %v1149_v33 = vpop.f32.mrb[25].mxu0 }
 0x190   :  { %v1365_v40 = vmax.f32 %v1363_v60, %v1364_v56  ;;  %v1368_v25 = vmax.f32 %v1366_v3, %v1367_v20  ;;  %v1265_v50 = vmax.f32 %v1233_v42, 0.0  ;;  %v1815_v10 = vadd.f32 %v1149_v33, %v2543_v41  ;;  %v1151_v6 = vpop.f32.mrb[26].mxu0 }
 0x191   :  { %v1428_v2 = vpack.c.bf16 %v1358_v49, %v1358_v49  ;;  %v1375_v4 = vmax.f32 %v1373_v0, %v1374_v39  ;;  %v1300_v53 = vmul.f32 %v2579_v59, %v1264_v13  ;;  %v1234_v7 = vadd.f32 %v1814_v24, %v2560_v45  ;;  %v1153_v22 = vpop.f32.mrb[27].mxu0 }
 0x192   :  { %v1429_v18 = vpack.c.bf16 %v1365_v40, %v1365_v40  ;;  %v1369_v15 = vrot.slane %v1368_v25, 2  ;;  %v1301_v55 = vmul.f32 %v2590_v9, %v1265_v50  ;;  %v1235_v32 = vadd.f32 %v1815_v10, %v2562_v54 }
 0x193   :  { %v2671_v16 = vunpack.c.l.b16 %v1428_v2  ;;  %v1376_v37 = vrot.slane %v1375_v4, 2  ;;  %v1380_v34 = vmax.f32 %v1298_v19, %v1300_v53  ;;  %v1266_v43 = vmax.f32 %v1234_v7, 0.0 }
 0x194   :  { %v2673_v41 = vunpack.c.l.b16 %v1429_v18  ;;  %v1370_v44 = vmax.f32 %v1368_v25, %v1369_v15  ;;  %v1387_v58 = vmax.f32 %v1299_v26, %v1301_v55  ;;  %v1267_v28 = vmax.f32 %v1235_v32, 0.0 }
 0x195   :  { %v1377_v63 = vmax.f32 %v1375_v4, %v1376_v37  ;;  %v1381_v5 = vrot.slane %v1380_v34, 4  ;;  %v1302_v35 = vmul.f32 %v2574_v8, %v1266_v43  ;;  %v1816_v1 = vadd.f32 %v1151_v6, %v2545_v47 }
 0x196   :  { %v1371_v30 = vrot.slane %v1370_v44, 1  ;;  %v1388_v23 = vrot.slane %v1387_v58, 4  ;;  %v1303_v38 = vmul.f32 %v2585_v61, %v1267_v28  ;;  %v1817_v60 = vadd.f32 %v1153_v22, %v2547_v48  ;;  %v1157_v3 = vpop.f32.mrb[28].mxu0 }
 0x197   :  { %v1378_v11 = vrot.slane %v1377_v63, 1  ;;  %v1382_v29 = vmax.f32 %v1380_v34, %v1381_v5  ;;  %v1236_v36 = vadd.f32 %v1816_v1, %v2560_v45  ;;  %v1818_v0 = vadd.f32 %v1157_v3, %v2549_v12  ;;  %v1159_v19 = vpop.f32.mrb[29].mxu0 }
 0x198   :  { %v1372_v14 = vmax.f32 %v1370_v44, %v1371_v30  ;;  %v1389_v56 = vmax.f32 %v1387_v58, %v1388_v23  ;;  %v1237_v47 = vadd.f32 %v1817_v60, %v2562_v54  ;;  %v1819_v20 = vadd.f32 %v1159_v19, %v2551_v52  ;;  %v1161_v26 = vpop.f32.mrb[30].mxu0 }
 0x199   :  { %v1379_v42 = vmax.f32 %v1377_v63, %v1378_v11  ;;  %v1383_v21 = vrot.slane %v1382_v29, 2  ;;  %v1268_v49 = vmax.f32 %v1236_v36, 0.0  ;;  %v1238_v48 = vadd.f32 %v1818_v0, %v2560_v45  ;;  %v1163_v39 = vpop.f32.mrb[31].mxu0 }
 0x19a   :  { %v1430_v13 = vpack.c.bf16 %v1372_v14, %v1372_v14  ;;  %v1390_v24 = vrot.slane %v1389_v56, 2  ;;  %v1269_v33 = vmax.f32 %v1237_v47, 0.0  ;;  %v1239_v40 = vadd.f32 %v1819_v20, %v2562_v54 }
 0x19b   :  { %v1431_v12 = vpack.c.bf16 %v1379_v42, %v1379_v42  ;;  %v1384_v25 = vmax.f32 %v1382_v29, %v1383_v21  ;;  %v1304_v50 = vmul.f32 %v2579_v59, %v1268_v49  ;;  %v1270_v10 = vmax.f32 %v1238_v48, 0.0 }
 0x19c   :  { %v1501_v6 = vunpack.c.l.b16 %v1430_v13  ;;  %v1391_v52 = vmax.f32 %v1389_v56, %v1390_v24  ;;  %v1305_v2 = vmul.f32 %v2590_v9, %v1269_v33  ;;  %v1271_v4 = vmax.f32 %v1239_v40, 0.0 }
 0x19d   :  { %v1502_v53 = vunpack.c.l.b16 %v1431_v12  ;;  %v1385_v7 = vrot.slane %v1384_v25, 1  ;;  %v1394_v22 = vmax.f32 %v1302_v35, %v1304_v50  ;;  %v1306_v18 = vmul.f32 %v2574_v8, %v1270_v10 }
 0x19e   :  { %v1392_v15 = vrot.slane %v1391_v52, 1  ;;  %v1401_v55 = vmax.f32 %v1303_v38, %v1305_v2  ;;  %v1307_v32 = vmul.f32 %v2585_v61, %v1271_v4  ;;  %v1820_v37 = vadd.f32 %v1161_v26, %v2556_v46 }
 0x19f   :  { %v1386_v34 = vmax.f32 %v1384_v25, %v1385_v7  ;;  %v1395_v43 = vrot.slane %v1394_v22, 4  ;;  %v1821_v44 = vadd.f32 %v1163_v39, %v2558_v31  ;;  %v1512_v58 = vsel %vm1511_vm6, %v2651_v27, %v2641_v17 }
 0x1a0   :  { %v1393_v28 = vmax.f32 %v1391_v52, %v1392_v15  ;;  %v1402_v63 = vrot.slane %v1401_v55, 4  ;;  %v1240_v5 = vadd.f32 %v1820_v37, %v2560_v45  ;;  %v1514_v8 = vsel %vm1513_vm7, %v2671_v16, %v1512_v58  ;;  %v1751_v37 = vld [vmem:[%s2722_s5] ss:$0 sm:$0xff] }
 0x1a1   :  { %v1432_v35 = vpack.c.bf16 %v1386_v34, %v1386_v34  ;;  %v1396_v1 = vmax.f32 %v1394_v22, %v1395_v43  ;;  %v1241_v61 = vadd.f32 %v1821_v44, %v2562_v54  ;;  %v1516_v46 = vsel %vm1515_vm8, %v1501_v6, %v1514_v8 }
 0x1a2   :  { %v1433_v30 = vpack.c.bf16 %v1393_v28, %v1393_v28  ;;  %v1403_v23 = vmax.f32 %v1401_v55, %v1402_v63  ;;  %v1272_v31 = vmax.f32 %v1240_v5, 0.0  ;;  %v1523_v17 = vsel %vm1509_vm5, %v2636_v62, %v2623_v51 }
 0x1a3   :  { %v1503_v27 = vunpack.c.l.b16 %v1432_v35  ;;  %v1397_v38 = vrot.slane %v1396_v1, 2  ;;  %v1273_v60 = vmax.f32 %v1241_v61, 0.0  ;;  %v1524_v45 = vsel %vm1511_vm6, %v2654_v57, %v1523_v17 }
 0x1a4   :  { %v1404_v16 = vrot.slane %v1403_v23, 2  ;;  %v1308_v3 = vmul.f32 %v2579_v59, %v1272_v31  ;;  %v1504_v11 = vunpack.c.l.b16 %v1433_v30  ;;  %v1525_v54 = vsel %vm1513_vm7, %v2673_v41, %v1524_v45 }
 0x1a5   :  { %v1398_v29 = vmax.f32 %v1396_v1, %v1397_v38  ;;  %v1309_v36 = vmul.f32 %v2590_v9, %v1273_v60  ;;  %v1518_v0 = vsel %vm1517_vm9, %v1503_v27, %v1516_v46  ;;  %v1526_v51 = vsel %vm1515_vm8, %v1502_v53, %v1525_v54 }
 0x1a6   :  { %v1405_v62 = vmax.f32 %v1403_v23, %v1404_v16  ;;  %v1408_v19 = vmax.f32 %v1306_v18, %v1308_v3  ;;  %v1527_v14 = vsel %vm1517_vm9, %v1504_v11, %v1526_v51 }
 0x1a7   :  { %v1399_v56 = vrot.slane %v1398_v29, 1  ;;  %v1415_v57 = vmax.f32 %v1307_v32, %v1309_v36 }
 0x1a8   :  { %v1406_v47 = vrot.slane %v1405_v62, 1  ;;  %v1409_v20 = vrot.slane %v1408_v19, 4 }
 0x1a9   :  { %v1400_v59 = vmax.f32 %v1398_v29, %v1399_v56  ;;  %v1416_v26 = vrot.slane %v1415_v57, 4 }
 0x1aa   :  { %v1410_v42 = vmax.f32 %v1408_v19, %v1409_v20  ;;  %v1407_v21 = vmax.f32 %v1405_v62, %v1406_v47 }
 0x1ab   :  { %v1434_v41 = vpack.c.bf16 %v1400_v59, %v1400_v59  ;;  %v1417_v49 = vmax.f32 %v1415_v57, %v1416_v26 }
 0x1ac   :  { %v1411_v48 = vrot.slane %v1410_v42, 2  ;;  %v1435_v9 = vpack.c.bf16 %v1407_v21, %v1407_v21 }
 0x1ad   :  { %v1505_v39 = vunpack.c.l.b16 %v1434_v41  ;;  %v1418_v13 = vrot.slane %v1417_v49, 2 }
 0x1ae   :  { %v1412_v24 = vmax.f32 %v1410_v42, %v1411_v48  ;;  %v1506_v33 = vunpack.c.l.b16 %v1435_v9 }
 0x1af   :  { %v1419_v40 = vmax.f32 %v1417_v49, %v1418_v13  ;;  %v1520_v12 = vsel %vm1519_vm10, %v1505_v39, %v1518_v0 }
 0x1b0   :  { %v1413_v25 = vrot.slane %v1412_v24, 1  ;;  %v1528_v50 = vsel %vm1519_vm10, %v1506_v33, %v1527_v14 }
 0x1b1   :  { %v1420_v10 = vrot.slane %v1419_v40, 1 }
 0x1b2   :  { %v1414_v6 = vmax.f32 %v1412_v24, %v1413_v25 }
 0x1b3   :  { %v1421_v52 = vmax.f32 %v1419_v40, %v1420_v10 }
 0x1b4   :  { %v1436_v2 = vpack.c.bf16 %v1414_v6, %v1414_v6 }
 0x1b5   :  { %v1437_v4 = vpack.c.bf16 %v1421_v52, %v1421_v52 }
 0x1b6   :  { %v1507_v53 = vunpack.c.l.b16 %v1436_v2 }
 0x1b7   :  { %v1508_v7 = vunpack.c.l.b16 %v1437_v4 }
 0x1b8   :  { %v1522_v22 = vsel %vm1521_vm11, %v1507_v53, %v1520_v12 }
 0x1b9   :  { %v1529_v18 = vsel %vm1521_vm11, %v1508_v7, %v1528_v50  ;;  %v1530_v55 = vpack.c.b16 %v1522_v22, %v1522_v22 }
 0x1ba   :  { %v1531_v15 = vpack.c.b16 %v1529_v18, %v1529_v18 }
 0x1bc   :  { %1662 = vmatprep.mubr.bf16.mxu1 %v1531_v15 }
 0x1bd   :  { %1663 = vmatmul.mubr.bf16.vlgmr.msra.gmra.mrb[32].mxu1 %v1530_v55 }
 0x290   :  { %v1784_v32 = vpop.f32.mrb[32].mxu1 }
 0x291   :  { %v1785_v34 = vpop.f32.mrb[33].mxu1 }
 0x292   :  { %v1786_v43 = vadd.f32 %v1785_v34, %v1784_v32  ;;  %v1787_v44 = vpop.f32.mrb[34].mxu1 }
 0x293   :  { %v1788_v58 = vpop.f32.mrb[35].mxu1 }
 0x294   :  { %v1665_v28 = vadd.f32 %v1786_v43, %v1751_v37 }
 0x296   :  { %1670 = vst [vmem:[%s2723_s6] sm:$0xff] %v1665_v28 }

</bundles_post_ra>
